<compile_context>
chip_gen: v6e
topology: v6e:2x2x1
jax: 0.10.0
libtpu: 0.0.40
codegen_flags: <defaults>
</compile_context>

<pallas_src>
import functools

import jax
import jax.numpy as jnp
from jax.experimental import pallas as pl
from jax.experimental.pallas import tpu as pltpu

_MIB = 1024 * 1024


def _cdiv(a, b):
    return -(-a // b)


def _round_up(a, b):
    return _cdiv(a, b) * b


def _vmem_capacity_bytes():
    """Physical VMEM of the attached TPU. Fallback: 64 MiB (v7x, the smallest)."""
    try:
        info = pltpu.get_tpu_info()
        for attr in ("vmem_capacity_bytes", "vmem_bytes", "vmem_size_bytes"):
            v = getattr(info, attr, None)
            if v:
                return int(v)
    except Exception:
        pass
    return 64 * _MIB


def _pixel_norm_kernel(xt_ref, ot_ref, *, eps, leak):
    """One point tile, channels-major.

    xt_ref / ot_ref: (C, TN) -- channels on sublanes, points on lanes.
    Single fused pass: square -> sublane sum -> rsqrt -> scale -> leaky ReLU
    -> one full-width (unmasked) store.
    """
    x = xt_ref[...].astype(jnp.float32)                 # (C, TN), f32 math
    norm = jnp.sum(x * x, axis=0, keepdims=True)        # (1, TN) sublane reduce
    inv = jax.lax.rsqrt(norm + eps)                     # EUP rsqrt, one per point
    y = x * inv                                         # broadcast over sublanes
    y = jnp.where(y >= 0.0, y, leak * y)                # F.leaky_relu(y, leak)
    ot_ref[...] = y.astype(ot_ref.dtype)


def _pick_point_tile(n, c, itemsize, vmem_cap):
    """Points-per-block on the lane axis: 2-8 MiB blocks, >= 2 grid steps."""
    if n <= 128:
        return n                                        # one block == full array dims
    # Generation-aware block target: 8 MiB on 128-MiB-VMEM chips (v5e/v6e),
    # ~5 MiB on v7x (64 MiB VMEM), never below 2 MiB.
    block_target = max(2 * _MIB, min(8 * _MIB, vmem_cap // 12))
    tn = max(128, (block_target // max(1, c * itemsize)) // 128 * 128)
    # Keep at least two grid steps so the "parallel" axis has work for both
    # v7x TensorCores and the pipeline can overlap DMA with compute.
    tn = min(tn, _round_up(_cdiv(n, 2), 128))
    return max(128, tn)


def pixel_norm_leaky_relu_cmajor(xt, *, eps=1e-5, leak=0.0):
    """PixelNorm + leaky ReLU on channels-major features.

    xt: (C, N). Preferred layout: no transpose / pad / slice HLOs are emitted
    around the pallas_call. Returns (C, N) in xt.dtype.
    """
    c, n = xt.shape
    itemsize = xt.dtype.itemsize
    vmem_cap = _vmem_capacity_bytes()
    tn = _pick_point_tile(n, c, itemsize, vmem_cap)
    n_tiles = _cdiv(n, tn)

    block_bytes = tn * c * itemsize
    # in + out, each double-buffered -> 4x block bytes, plus headroom; never
    # below the default scoped limit, never above ~3/4 of physical VMEM.
    vmem_limit = max(16 * _MIB,
                     min(int(vmem_cap * 3 / 4), 4 * block_bytes + 8 * _MIB))

    kernel = functools.partial(_pixel_norm_kernel, eps=float(eps), leak=float(leak))
    cost = pl.CostEstimate(
        flops=5 * n * c,                  # square, reduce-add, scale, select
        transcendentals=n,                # one rsqrt per point
        bytes_accessed=2 * n * c * itemsize,
    )
    # NOTE(v7x): if the trace still shows exposed per-step DMA after the tile
    # bump, add pipeline_mode=pl.Buffered(3) to the specs (VMEM permitting).
    return pl.pallas_call(
        kernel,
        out_shape=jax.ShapeDtypeStruct((c, n), xt.dtype),
        grid=(n_tiles,),
        in_specs=[pl.BlockSpec((c, tn), lambda i: (0, i))],
        out_specs=pl.BlockSpec((c, tn), lambda i: (0, i)),
        compiler_params=pltpu.CompilerParams(
            dimension_semantics=("parallel",),
            vmem_limit_bytes=int(vmem_limit),
        ),
        cost_estimate=cost,
    )(xt)


def pixel_norm_leaky_relu(x, *, eps=1e-5, leak=0.0):
    """Module-compatible (N, C) entry point.

    The two transposes below are separate XLA HLOs (extra HBM passes). For
    best end-to-end performance keep features channels-major (C, N) in the
    surrounding graph and call pixel_norm_leaky_relu_cmajor directly.
    """
    out_t = pixel_norm_leaky_relu_cmajor(jnp.transpose(x), eps=eps, leak=leak)
    return jnp.transpose(out_t)


# ----------------------------- references ----------------------------------

def _reference_nc(x, *, eps, leak):
    f = x.astype(jnp.float32)
    norm = jnp.sum(f * f, axis=1, keepdims=True)
    f_norm = f / jnp.sqrt(norm + eps)
    return jnp.where(f_norm >= 0.0, f_norm, leak * f_norm).astype(x.dtype)


def _reference_cn(xt, *, eps, leak):
    f = xt.astype(jnp.float32)
    norm = jnp.sum(f * f, axis=0, keepdims=True)
    f_norm = f / jnp.sqrt(norm + eps)
    return jnp.where(f_norm >= 0.0, f_norm, leak * f_norm).astype(xt.dtype)


if __name__ == "__main__":
    # Module config: num_features=16, leakiness=0.1, eps=1e-5 (no parameters).
    num_features, leak, eps = 16, 0.1, 1e-5
    key = jax.random.PRNGKey(0)
    k1, k2, k3, k4 = jax.random.split(key, 4)

    # 1) Primary channels-major path: (C, N) = (16, 4096), f32, 2 pipelined tiles.
    xt = jax.random.normal(k1, (num_features, 4096), dtype=jnp.float32)
    out = jax.block_until_ready(pixel_norm_leaky_relu_cmajor(xt, eps=eps, leak=leak))
    ref = _reference_cn(xt, eps=eps, leak=leak)
    assert out.shape == xt.shape
    assert jnp.allclose(out, ref, atol=1e-4, rtol=1e-4), "cmajor f32 mismatch"

    # 2) Ragged N, tiny C, no padding anywhere: masked final block path.
    xt2 = jax.random.normal(k2, (4, 777), dtype=jnp.float32)
    out2 = jax.block_until_ready(pixel_norm_leaky_relu_cmajor(xt2, eps=eps, leak=leak))
    ref2 = _reference_cn(xt2, eps=eps, leak=leak)
    assert out2.shape == xt2.shape
    assert jnp.allclose(out2, ref2, atol=1e-4, rtol=1e-4), "ragged mismatch"
    assert bool(jnp.all(jnp.isfinite(out2))), "non-finite leaked from masked tail"

    # 3) bf16 I/O (HBM traffic halved; math stays f32 in-register).
    xt3 = jax.random.normal(k3, (num_features, 2048), dtype=jnp.float32).astype(jnp.bfloat16)
    out3 = jax.block_until_ready(pixel_norm_leaky_relu_cmajor(xt3, eps=eps, leak=leak))
    ref3 = _reference_cn(xt3, eps=eps, leak=leak)
    assert jnp.allclose(out3.astype(jnp.float32), ref3.astype(jnp.float32),
                        atol=1e-2, rtol=1e-2), "bf16 mismatch"

    # 4) Module-compatible (N, C) wrapper (boundary transposes, compat only).
    x4 = jax.random.normal(k4, (2048, num_features), dtype=jnp.float32)
    out4 = jax.block_until_ready(pixel_norm_leaky_relu(x4, eps=eps, leak=leak))
    ref4 = _reference_nc(x4, eps=eps, leak=leak)
    assert out4.shape == x4.shape
    assert jnp.allclose(out4, ref4, atol=1e-4, rtol=1e-4), "(N,C) wrapper mismatch"

    print("KERNEL_OK")
</pallas_src>

<mosaic_0001>
module attributes {stable_mosaic.version = 11 : i64} {
  func.func @_pixel_norm_kernel(%arg0: i32, %arg1: memref<16x2048xf32, #tpu.memory_space<vmem>>, %arg2: memref<16x2048xf32, #tpu.memory_space<vmem>>) attributes {dimension_semantics = [#tpu.dimension_semantics<parallel>], iteration_bounds = array<i64: 2>, scalar_prefetch = 0 : i64, scratch_operands = 0 : i64, tpu.core_type = #tpu.core_type<tc>, window_params = [{transform_indices = @transform_0, window_bounds = array<i64: 16, 2048>}, {transform_indices = @transform_1, window_bounds = array<i64: 16, 2048>}]} {
    %c0 = arith.constant 0 : index
    %c0_0 = arith.constant 0 : index
    %0 = vector.load %arg1[%c0, %c0_0] : memref<16x2048xf32, #tpu.memory_space<vmem>>, vector<16x2048xf32>
    %1 = arith.mulf %0, %0 : vector<16x2048xf32>
    %cst = arith.constant dense<0.000000e+00> : vector<2048xf32>
    %2 = vector.multi_reduction <add>, %1, %cst [0] : vector<16x2048xf32> to vector<2048xf32>
    %3 = vector.shape_cast %2 : vector<2048xf32> to vector<1x2048xf32>
    %cst_1 = arith.constant 9.99999974E-6 : f32
    %4 = vector.broadcast %cst_1 : f32 to vector<1x2048xf32>
    %5 = arith.addf %3, %4 : vector<1x2048xf32>
    %6 = math.rsqrt %5 : vector<1x2048xf32>
    %7 = vector.broadcast %6 : vector<1x2048xf32> to vector<16x2048xf32>
    %8 = arith.mulf %0, %7 : vector<16x2048xf32>
    %cst_2 = arith.constant 0.000000e+00 : f32
    %9 = vector.broadcast %cst_2 : f32 to vector<16x2048xf32>
    %10 = arith.cmpf oge, %8, %9 : vector<16x2048xf32>
    %cst_3 = arith.constant 1.000000e-01 : f32
    %11 = vector.broadcast %cst_3 : f32 to vector<16x2048xf32>
    %12 = arith.mulf %11, %8 : vector<16x2048xf32>
    %13 = arith.select %10, %8, %12 : vector<16x2048xi1>, vector<16x2048xf32>
    %c0_4 = arith.constant 0 : index
    %c0_5 = arith.constant 0 : index
    %14 = vector.load %arg2[%c0_4, %c0_5] : memref<16x2048xf32, #tpu.memory_space<vmem>>, vector<16x2048xf32>
    tpu.vector_store %arg2[%c0_4, %c0_5], %13 {strides = array<i32>} : memref<16x2048xf32, #tpu.memory_space<vmem>>, vector<16x2048xf32>,
    return
  }
  func.func @transform_0(%arg0: i32) -> (i32, i32) {
    %c0_i32 = arith.constant 0 : i32
    %c0_i32_0 = arith.constant 0 : i32
    return %c0_i32, %arg0 : i32, i32
  }
  func.func @transform_1(%arg0: i32) -> (i32, i32) {
    %c0_i32 = arith.constant 0 : i32
    %c0_i32_0 = arith.constant 0 : i32
    return %c0_i32, %arg0 : i32, i32
  }
}

</mosaic_0001>

<bundles_post_ra>
// kernel: tpu_custom_call.1
= control target key start
LH: loop header
LB: loop body
LE: loop exit
PB: predicated region body
PF: predicated region fallthrough
CT: control target
= control target key end

     0   :  { %6 = vsyncpa [#allocation3], 0  ;;  %s1246_s0 = inlined_call_operand.hbm [shape: f32[16,4096], index: 0, kind: input, shape index: {}]   ;;  %s1247_s1 = inlined_call_operand.hbm [shape: f32[16,4096], index: 1, kind: output, shape index: {}]  }
   0x1   :  { %8 = vsyncpa [#allocation3 + $0x1], 0 }
   0x2   :  { %9 = vsyncpa [#allocation4], 0 }
   0x3   :  { %11 = vsyncpa [#allocation4 + $0x1], 0  ;;  %s804_s6 = smov 0   ;;  %s806_s7 = smov 0  }
   0x4   :  { %s808_s8 = smov 0   ;;  %s810_s9 = smov 0  }
   0x5 LB: > { %s825_s10 = sadd.s32 4294967295, %s784_s9   ;;  %s592_s11 = sadd.s32 4294967294, %s784_s9   ;;  %s784_s9 = sphi %s810_s9, %s1263_s9   ;;  %s780_s8 = sphi %s808_s8, %s1262_s8   ;;  %s776_s7 = sphi %s806_s7, %s1261_s7   ;;  %s772_s6 = sphi %s804_s6, %s1260_s6  }
   0x6   : > { %s829_s12 = sadd.s32 1, %s784_s9   ;;  %s24_s13 = sadd.s32 1, %s780_s8 }
   0x7   : > { %s21_s14 = ssub.s32 %s784_s9, %s829_s12  ;;  %p31_p0 = scmp.ne.s32.totalorder %s780_s8, %s776_s7 }
   0x8   : > { %p22_p1 = scmp.eq.s32.totalorder %s21_s14, 0  ;;  %p32_p2 = scmp.eq.s32.totalorder %s784_s9, 0 }
   0x9   : > { %p37_p3 = scmp.ne.s32.totalorder %s776_s7, %s772_s6  ;;  %p38_p4 = scmp.eq.s32.totalorder %s825_s10, 0 }
   0xa   : > { %s841_s15 = scalar_select %p22_p1, %s780_s8, %s24_s13  }
   0xb   : > { %p843_p5 = por %p32_p2, %p31_p0  ;;  %p847_p6 = por %p38_p4, %p37_p3 }
   0xc   : > { %p61_p7 = scmp.eq.s32.totalorder %s825_s10, 1  ;;  %p67_p8 = scmp.eq.s32.totalorder %s592_s11, 1 }
   0xd   : > { %s1251_s17 = scalar_select %p847_p6, 1, 0 }
   0xe   : > { %p620_p10 = scmp.lt.s32.totalorder %s784_s9, 2  ;;  %p854_p11 = por %p61_p7, %p31_p0 }
   0xf   : > { %p858_p12 = por %p67_p8, %p37_p3  ;;  %s87_s20 = sand.u32 1, %s780_s8  }
  0x10   : > { %s1252_s18 = scalar_select %p854_p11, 1, 0 }
  0x11   : > { %s1253_s19 = scalar_select %p858_p12, 1, 0 }
  0x12   : > { %s606_s21 = sshll.u32 %s784_s9, 11  ;;  %s595_s22 = sshll.u32 %s87_s20, 8 }
  0x13   : > { %s867_s25 = scalar_lea.hbm %s1246_s0, %s606_s21  ;;  %s91_s26 = scalar_lea.vmem [#allocation2], %s595_s22 }
  0x14   : > { %s98_s27 = sshll.u32 %s91_s26, 4  ;;  %p871_p13 = pnand %p620_p10, %p843_p5  ;;  %s875_s27 = int_to_ptr.vmem [resolvable:$true] %s98_s27 }
  0x15   : > { %s878_s29 = scalar_lea.sflag [#allocation3], %s87_s20  ;;  %s692_s30 = scalar_lea.hbm %s867_s25, 4096 }
  0x16   : > { %p693_p1 = scmp.ne.s32.totalorder %s867_s25, %s692_s30  ;;  %p694_p2 = pneg %p871_p13 }
  0x17   : > { %s697_s4 = scalar_lea.hbm %s1246_s0, 8192  ;;  %p698_p5 = scmp.lt.s32.totalorder %s867_s25, %s1246_s0 }
  0x18   : > { %p695_p3 = pnand %p694_p2, %p693_p1  ;;  %p699_p7 = scmp.lt.s32.totalorder %s697_s4, %s692_s30 }
  0x1a   : > { %p696_p4 = pneg %p695_p3  ;;  %p700_p8 = por %p699_p7, %p698_p5 }
  0x1c   : > { %p701_p10 = pnand %p700_p8, %p696_p4 }
  0x1e   : > { %704 = shalt.err (!%p701_p10)
}
  0x1f   : > { %s705_s13 = scalar_lea.vmem %s875_s27, 4096  ;;  %s786_s14 = smov [#allocation2]  }
  0x20   : > { %p706_p9 = scmp.ne.s32.totalorder %s875_s27, %s705_s13  ;;  %s710_s16 = sshll.u32 %s786_s14, 4  ;;  %s711_s16 = int_to_ptr.vmem [resolvable:$false] %s710_s16 }
  0x21   : > { %s712_s20 = scalar_lea.vmem %s711_s16, 8192  ;;  %p713_p3 = scmp.lt.s32.totalorder %s875_s27, %s711_s16 }
  0x22   : > { %p708_p0 = pnand %p706_p9, %p694_p2  ;;  %p714_p12 = scmp.lt.s32.totalorder %s712_s20, %s705_s13 }
  0x24   : > { %p709_p1 = pneg %p708_p0  ;;  %p715_p11 = por %p714_p12, %p713_p3 }
  0x26   : > { %p716_p6 = pnand %p715_p11, %p709_p1 }
  0x28   : > { %719 = shalt.err (!%p716_p6)
}
  0x29   : > { %s787_s21 = smov 4096   ;;  %s788_s22 = smov 2048  }
  0x2a   : > { %s789_s23 = smov 128   ;;  %p106_p9 = scmp.lt.s32.totalorder %s784_s9, 3 }
  0x2b   : > { %615 = dma.hbm_to_vmem [thread:$0]  (!%p871_p13), %s867_s25, 4096, %s875_s27, %s878_s29, %s787_s21, %s788_s22, %s789_s23  }
  0x2c   : > { %p1255_p0 = scmp.ge.s32.totalorder %s784_s9, 1 }
  0x2e   : > { %p107_p2 = pnand %p1255_p0, %p106_p9 }
  0x2f   : > { %s903_s24 = sand.u32 (!%p107_p2), 1, %s776_s7   ;;  %p1256_p6 = scmp.ne.s32.totalorder (!%p107_p2), %s1251_s17, 0 }
  0x30   : > { %110 = sbr.rel (%p107_p2) target bundleno = 152 (0x98), region = 24  ;;  %s599_s26 = sshll.u32 (!%p107_p2), %s903_s24, 8 }
  0x31   : > { %s113_s30 = scalar_lea.sflag (!%p107_p2), [#allocation3], %s903_s24  ;;  %s909_s2 = scalar_lea.vmem (!%p107_p2), [#allocation2], %s599_s26 }
  0x35   : > { %763 = dma.done.wait (%p1256_p6), %s113_s30, 4096  }
  0x36   : > { %765 = vsyncadd (%p1256_p6), %s113_s30, 4294963200  ;;  %v916_v0 = vld [vmem:[%s909_s2] sm:$0xff]  ;;  %v922_v2 = vld [vmem:[%s909_s2 + $0x8] sm:$0xff]  ;;  %s1110_s17 = scalar_lea.vmem [#allocation5], %s599_s26  ;;  %s607_s25 = sshll.u32 %s825_s10, 11 }
  0x37   : > { %v919_v1 = vld [vmem:[%s909_s2 + $0x80] sm:$0xff]  ;;  %v169_v3 = vmul.f32 %v916_v0, %v916_v0  ;;  %v929_v5 = vld [vmem:[%s909_s2 + $0x88] sm:$0xff]  ;;  %v170_v6 = vmul.f32 %v922_v2, %v922_v2  ;;  %v934_v7 = vld [vmem:[%s909_s2 + $0x10] sm:$0xff]  ;;  %s519_s27 = sshll.u32 %s1110_s17, 4  ;;  %s1199_s3 = scalar_lea.hbm %s1247_s1, %s607_s25  ;;  %s1201_s27 = int_to_ptr.vmem [resolvable:$true] %s519_s27 }
  0x38   : > { %v185_v4 = vmul.f32 %v919_v1, %v919_v1  ;;  %v937_v8 = vld [vmem:[%s909_s2 + $0x90] sm:$0xff]  ;;  %v186_v9 = vmul.f32 %v929_v5, %v929_v5  ;;  %v171_v10 = vmul.f32 %v934_v7, %v934_v7  ;;  %v946_v12 = vld [vmem:[%s909_s2 + $0x18] sm:$0xff]  ;;  %v952_v14 = vld [vmem:[%s909_s2 + $0x20] sm:$0xff]  ;;  %s506_s10 = scalar_lea.sflag [#allocation4], %s903_s24  ;;  %s720_s4 = scalar_lea.vmem %s1201_s27, 4096 }
  0x39   : > { %v187_v11 = vmul.f32 %v937_v8, %v937_v8  ;;  %v949_v13 = vld [vmem:[%s909_s2 + $0x98] sm:$0xff]  ;;  %v172_v16 = vmul.f32 %v946_v12, %v946_v12  ;;  %v959_v18 = vld [vmem:[%s909_s2 + $0xa0] sm:$0xff]  ;;  %v173_v19 = vmul.f32 %v952_v14, %v952_v14  ;;  %v964_v20 = vld [vmem:[%s909_s2 + $0x28] sm:$0xff]  ;;  %p721_p11 = scmp.ne.s32.totalorder %s1201_s27, %s720_s4  ;;  %p1257_p12 = scmp.ne.s32.totalorder %s1252_s18, 0 }
  0x3a   : > { %v201_v15 = vadd.f32 %v185_v4, %v169_v3  ;;  %v188_v17 = vmul.f32 %v949_v13, %v949_v13  ;;  %v967_v21 = vld [vmem:[%s909_s2 + $0xa8] sm:$0xff]  ;;  %v208_v22 = vadd.f32 %v186_v9, %v170_v6  ;;  %v189_v24 = vmul.f32 %v959_v18, %v959_v18  ;;  %v974_v26 = vld [vmem:[%s909_s2 + $0x30] sm:$0xff]  ;;  %v980_v28 = vld [vmem:[%s909_s2 + $0x38] sm:$0xff]  ;;  %s790_s5 = smov [#allocation5]  }
  0x3b   : > { %v215_v23 = vadd.f32 %v187_v11, %v171_v10  ;;  %v174_v25 = vmul.f32 %v964_v20, %v964_v20  ;;  %v977_v27 = vld [vmem:[%s909_s2 + $0xb0] sm:$0xff]  ;;  %v190_v31 = vmul.f32 %v967_v21, %v967_v21  ;;  %v175_v32 = vmul.f32 %v974_v26, %v974_v26  ;;  %v989_v37 = vld [vmem:[%s909_s2 + $0xb8] sm:$0xff]  ;;  %p722_p13 = pnand %p721_p11, %p1257_p12  ;;  %s724_s11 = sshll.u32 %s790_s5, 4  ;;  %s725_s11 = int_to_ptr.vmem [resolvable:$false] %s724_s11 }
  0x3c   : > { %v202_v29 = vrot.slane %v201_v15, 4  ;;  %v222_v30 = vadd.f32 %v188_v17, %v172_v16  ;;  %v209_v33 = vrot.slane %v208_v22, 4  ;;  %v229_v35 = vadd.f32 %v189_v24, %v173_v19  ;;  %s726_s13 = scalar_lea.vmem %s725_s11, 8192  ;;  %p727_p5 = scmp.lt.s32.totalorder %s1201_s27, %s725_s11 }
  0x3d   : > { %v216_v34 = vrot.slane %v215_v23, 4  ;;  %v191_v36 = vmul.f32 %v977_v27, %v977_v27  ;;  %v236_v40 = vadd.f32 %v190_v31, %v174_v25  ;;  %v176_v41 = vmul.f32 %v980_v28, %v980_v28  ;;  %p723_p4 = pneg %p722_p13  ;;  %p728_p7 = scmp.lt.s32.totalorder %s726_s13, %s720_s4 }
  0x3e   : > { %v203_v38 = vadd.f32 %v202_v29, %v201_v15  ;;  %v223_v39 = vrot.slane %v222_v30, 4  ;;  %v210_v42 = vadd.f32 %v209_v33, %v208_v22  ;;  %v230_v44 = vrot.slane %v229_v35, 4  ;;  %v996_v33 = vld [vmem:[%s909_s2 + $0x40] sm:$0xff] }
  0x3f   : > { %v217_v43 = vadd.f32 %v216_v34, %v215_v23  ;;  %v243_v45 = vadd.f32 %v191_v36, %v175_v32  ;;  %v237_v48 = vrot.slane %v236_v40, 4  ;;  %v192_v49 = vmul.f32 %v989_v37, %v989_v37  ;;  %p729_p8 = por %p728_p7, %p727_p5 }
  0x40   : > { %v204_v46 = vrot.slane %v203_v38, 2  ;;  %v224_v47 = vadd.f32 %v223_v39, %v222_v30  ;;  %v211_v50 = vrot.slane %v210_v42, 2  ;;  %v231_v52 = vadd.f32 %v230_v44, %v229_v35  ;;  %v999_v39 = vld [vmem:[%s909_s2 + $0xc0] sm:$0xff]  ;;  %v1005_v44 = vld [vmem:[%s909_s2 + $0xc8] sm:$0xff] }
  0x41   : > { %v218_v51 = vrot.slane %v217_v43, 2  ;;  %v244_v53 = vrot.slane %v243_v45, 4  ;;  %v238_v56 = vadd.f32 %v237_v48, %v236_v40  ;;  %v250_v57 = vadd.f32 %v192_v49, %v176_v41  ;;  %v1010_v48 = vld [vmem:[%s909_s2 + $0x50] sm:$0xff]  ;;  %p730_p10 = pnand %p729_p8, %p723_p4 }
  0x42   : > { %v205_v54 = vadd.f32 %v204_v46, %v203_v38  ;;  %v225_v55 = vrot.slane %v224_v47, 2  ;;  %v212_v58 = vadd.f32 %v211_v50, %v210_v42  ;;  %v232_v60 = vrot.slane %v231_v52, 2 }
  0x43   : > { %v219_v59 = vadd.f32 %v218_v51, %v217_v43  ;;  %v245_v61 = vadd.f32 %v244_v53, %v243_v45  ;;  %v239_v3 = vrot.slane %v238_v56, 2  ;;  %v251_v4 = vrot.slane %v250_v57, 4  ;;  %v1002_v43 = vld [vmem:[%s909_s2 + $0x48] sm:$0xff]  ;;  %v1018_v53 = vld [vmem:[%s909_s2 + $0x58] sm:$0xff] }
  0x44   : > { %v206_v62 = vrot.slane %v205_v54, 1  ;;  %v226_v63 = vadd.f32 %v225_v55, %v224_v47  ;;  %v213_v6 = vrot.slane %v212_v58, 1  ;;  %v233_v10 = vadd.f32 %v232_v60, %v231_v52  ;;  %v1015_v52 = vld [vmem:[%s909_s2 + $0xd0] sm:$0xff] }
  0x45   : > { %v220_v9 = vrot.slane %v219_v59, 1  ;;  %v246_v11 = vrot.slane %v245_v61, 2  ;;  %v240_v17 = vadd.f32 %v239_v3, %v238_v56  ;;  %v252_v19 = vadd.f32 %v251_v4, %v250_v57  ;;  %v1025_v57 = vld [vmem:[%s909_s2 + $0xd8] sm:$0xff] }
  0x46   : > { %v207_v15 = vadd.f32 %v206_v62, %v205_v54  ;;  %v227_v16 = vrot.slane %v226_v63, 1  ;;  %v214_v22 = vadd.f32 %v213_v6, %v212_v58  ;;  %v234_v24 = vrot.slane %v233_v10, 1  ;;  %v1033_v62 = vld [vmem:[%s909_s2 + $0xe0] sm:$0xff]  ;;  %v1040_v6 = vld [vmem:[%s909_s2 + $0x68] sm:$0xff] }
  0x47   : > { %v221_v23 = vadd.f32 %v220_v9, %v219_v59  ;;  %v247_v25 = vadd.f32 %v246_v11, %v245_v61  ;;  %v241_v31 = vrot.slane %v240_v17, 1  ;;  %v253_v32 = vrot.slane %v252_v19, 2  ;;  %v1030_v61 = vld [vmem:[%s909_s2 + $0x60] sm:$0xff] }
  0x48   : > { %v313_v29 = vadd.f32 1e-05, %v207_v15  ;;  %v228_v30 = vadd.f32 %v227_v16, %v226_v63  ;;  %v314_v34 = vadd.f32 1e-05, %v214_v22  ;;  %v235_v36 = vadd.f32 %v234_v24, %v233_v10  ;;  %v1045_v15 = vld [vmem:[%s909_s2 + $0xe8] sm:$0xff]  ;;  %v1055_v24 = vld [vmem:[%s909_s2 + $0xf0] sm:$0xff] }
  0x49   : > { %v315_v35 = vadd.f32 1e-05, %v221_v23  ;;  %v248_v38 = vrot.slane %v247_v25, 1  ;;  %v242_v41 = vadd.f32 %v241_v31, %v240_v17  ;;  %v254_v42 = vadd.f32 %v253_v32, %v252_v19  ;;  %v1052_v23 = vld [vmem:[%s909_s2 + $0x70] sm:$0xff] }
  0x4a   : > { %660 = vrsqrt.f32 %v313_v29  ;;  %v316_v40 = vadd.f32 1e-05, %v228_v30  ;;  %v317_v45 = vadd.f32 1e-05, %v235_v36  ;;  %v177_v47 = vmul.f32 %v996_v33, %v996_v33  ;;  %v1062_v36 = vld [vmem:[%s909_s2 + $0x78] sm:$0xff] }
  0x4b   : > { %662 = vrsqrt.f32 %v314_v34  ;;  %v249_v46 = vadd.f32 %v248_v38, %v247_v25  ;;  %v318_v49 = vadd.f32 1e-05, %v242_v41  ;;  %v255_v50 = vrot.slane %v254_v42, 1 }
  0x4c   : > { %664 = vrsqrt.f32 %v315_v35  ;;  %v193_v51 = vmul.f32 %v999_v39, %v999_v39  ;;  %v178_v55 = vmul.f32 %v1002_v43, %v1002_v43  ;;  %v194_v56 = vmul.f32 %v1005_v44, %v1005_v44 }
  0x4d   : > { %666 = vrsqrt.f32 %v316_v40  ;;  %v319_v54 = vadd.f32 1e-05, %v249_v46  ;;  %v256_v58 = vadd.f32 %v255_v50, %v254_v42  ;;  %v179_v60 = vmul.f32 %v1010_v48, %v1010_v48 }
  0x4e   : > { %668 = vrsqrt.f32 %v317_v45  ;;  %v257_v59 = vadd.f32 %v193_v51, %v177_v47  ;;  %v264_v63 = vadd.f32 %v194_v56, %v178_v55  ;;  %v195_v3 = vmul.f32 %v1015_v52, %v1015_v52 }
  0x4f   : > { %670 = vrsqrt.f32 %v318_v49  ;;  %v180_v4 = vmul.f32 %v1018_v53, %v1018_v53  ;;  %v320_v9 = vadd.f32 1e-05, %v256_v58  ;;  %v196_v11 = vmul.f32 %v1025_v57, %v1025_v57 }
  0x50   : > { %672 = vrsqrt.f32 %v319_v54  ;;  %v258_v10 = vrot.slane %v257_v59, 4  ;;  %v265_v16 = vrot.slane %v264_v63, 4  ;;  %v271_v17 = vadd.f32 %v195_v3, %v179_v60 }
  0x51   : > { %v181_v19 = vmul.f32 %v1030_v61, %v1030_v61  ;;  %v197_v22 = vmul.f32 %v1033_v62, %v1033_v62  ;;  %674 = vrsqrt.f32 %v320_v9  ;;  %v278_v29 = vadd.f32 %v196_v11, %v180_v4 }
  0x52   : > { %v259_v25 = vadd.f32 %v258_v10, %v257_v59  ;;  %v182_v30 = vmul.f32 %v1040_v6, %v1040_v6  ;;  %v266_v31 = vadd.f32 %v265_v16, %v264_v63  ;;  %v272_v32 = vrot.slane %v271_v17, 4 }
  0x53   : > { %v285_v34 = vadd.f32 %v197_v22, %v181_v19  ;;  %v198_v35 = vmul.f32 %v1045_v15, %v1045_v15  ;;  %v279_v40 = vrot.slane %v278_v29, 4  ;;  %v183_v41 = vmul.f32 %v1052_v23, %v1052_v23 }
  0x54   : > { %v260_v38 = vrot.slane %v259_v25, 2  ;;  %v199_v42 = vmul.f32 %v1055_v24, %v1055_v24  ;;  %v267_v45 = vrot.slane %v266_v31, 2  ;;  %v273_v46 = vadd.f32 %v272_v32, %v271_v17 }
  0x55   : > { %v286_v47 = vrot.slane %v285_v34, 4  ;;  %v1068_v49 = vadd.f32 %v198_v35, %v182_v30  ;;  %v1070_v51 = vadd.f32 %v279_v40, %v278_v29  ;;  %v1076_v55 = vmul.f32 %v1062_v36, %v1062_v36 }
  0x56   : > { %v261_v50 = vadd.f32 %v260_v38, %v259_v25  ;;  %v1072_v54 = vadd.f32 %v199_v42, %v183_v41  ;;  %v268_v58 = vadd.f32 %v267_v45, %v266_v31  ;;  %v274_v59 = vrot.slane %v273_v46, 2 }
  0x57   : > { %v1078_v56 = vpop.eup %660  ;;  %v1080_v60 = vadd.f32 %v286_v47, %v285_v34  ;;  %v293_v63 = vrot.slane %v1068_v49, 4  ;;  %v281_v10 = vrot.slane %v1070_v51, 2 }
  0x58   : > { %v1083_v3 = vpop.eup %662  ;;  %v345_v4 = vmul.f32 %v1078_v56, %v916_v0  ;;  %v262_v9 = vrot.slane %v261_v50, 1  ;;  %v300_v11 = vrot.slane %v1072_v54, 4  ;;  %v269_v19 = vrot.slane %v268_v58, 1 }
  0x59   : > { %v1089_v16 = vpop.eup %664  ;;  %v346_v17 = vmul.f32 %v1083_v3, %v922_v2  ;;  %v275_v22 = vadd.f32 %v274_v59, %v273_v46  ;;  %v288_v25 = vrot.slane %v1080_v60, 2 }
  0x5a   : > { %v1094_v29 = vpop.eup %666  ;;  %vm377_vm0 = vcmp.ge.f32.partialorder %v345_v4, 0.0  ;;  %v409_v30 = vmul.f32 0.1, %v345_v4  ;;  %v347_v0 = vmul.f32 %v1089_v16, %v934_v7  ;;  %v263_v31 = vadd.f32 %v262_v9, %v261_v50 }
  0x5b   : > { %v1098_v32 = vpop.eup %668  ;;  %vm378_vm1 = vcmp.ge.f32.partialorder %v346_v17, 0.0  ;;  %v410_v34 = vmul.f32 0.1, %v346_v17  ;;  %v348_v2 = vmul.f32 %v1094_v29, %v946_v12  ;;  %v270_v35 = vadd.f32 %v269_v19, %v268_v58 }
  0x5c   : > { %v1102_v38 = vpop.eup %670  ;;  %v441_v40 = vsel %vm377_vm0, %v345_v4, %v409_v30  ;;  %vm379_vm2 = vcmp.ge.f32.partialorder %v347_v0, 0.0  ;;  %v411_v41 = vmul.f32 0.1, %v347_v0  ;;  %v349_v42 = vmul.f32 %v1098_v32, %v952_v14 }
  0x5d   : > { %v1106_v45 = vpop.eup %672  ;;  %473 = vst [vmem:[%s1110_s17] sm:$0xff] %v441_v40  ;;  %v442_v7 = vsel %vm378_vm1, %v346_v17, %v410_v34  ;;  %vm380_vm3 = vcmp.ge.f32.partialorder %v348_v2, 0.0  ;;  %v412_v12 = vmul.f32 0.1, %v348_v2  ;;  %v350_v46 = vmul.f32 %v1102_v38, %v964_v20  ;;  %v1126_v34 = vld [vmem:[%s909_s2 + $0xf8] sm:$0xff] }
  0x5e   : > { %474 = vst [vmem:[%s1110_s17 + $0x8] sm:$0xff] %v442_v7  ;;  %v443_v47 = vsel %vm379_vm2, %v347_v0, %v411_v41  ;;  %vm381_vm4 = vcmp.ge.f32.partialorder %v349_v42, 0.0  ;;  %v413_v14 = vmul.f32 0.1, %v349_v42  ;;  %v351_v50 = vmul.f32 %v1106_v45, %v974_v26  ;;  %v1118_v58 = vpop.eup %674 }
  0x5f   : > { %475 = vst [vmem:[%s1110_s17 + $0x10] sm:$0xff] %v443_v47  ;;  %v444_v59 = vsel %vm380_vm3, %v348_v2, %v412_v12  ;;  %vm382_vm5 = vcmp.ge.f32.partialorder %v350_v46, 0.0  ;;  %v414_v4 = vmul.f32 0.1, %v350_v46  ;;  %v321_v9 = vadd.f32 1e-05, %v263_v31 }
  0x60   : > { %476 = vst [vmem:[%s1110_s17 + $0x18] sm:$0xff] %v444_v59  ;;  %v445_v20 = vsel %vm381_vm4, %v349_v42, %v413_v14  ;;  %vm383_vm6 = vcmp.ge.f32.partialorder %v351_v50, 0.0  ;;  %v415_v17 = vmul.f32 0.1, %v351_v50  ;;  %v352_v19 = vmul.f32 %v1118_v58, %v980_v28 }
  0x61   : > { %477 = vst [vmem:[%s1110_s17 + $0x20] sm:$0xff] %v445_v20  ;;  %v446_v30 = vsel %vm382_vm5, %v350_v46, %v414_v4  ;;  %676 = vrsqrt.f32 %v321_v9  ;;  %v322_v26 = vadd.f32 1e-05, %v270_v35  ;;  %v276_v0 = vrot.slane %v275_v22, 1 }
  0x62   : > { %478 = vst [vmem:[%s1110_s17 + $0x28] sm:$0xff] %v446_v30  ;;  %v447_v2 = vsel %vm383_vm6, %v351_v50, %v415_v17  ;;  %vm384_vm7 = vcmp.ge.f32.partialorder %v352_v19, 0.0  ;;  %v416_v31 = vmul.f32 0.1, %v352_v19  ;;  %v282_v40 = vadd.f32 %v281_v10, %v1070_v51 }
  0x63   : > { %479 = vst [vmem:[%s1110_s17 + $0x30] sm:$0xff] %v447_v2  ;;  %678 = vrsqrt.f32 %v322_v26  ;;  %v277_v41 = vadd.f32 %v276_v0, %v275_v22  ;;  %v289_v42 = vadd.f32 %v288_v25, %v1080_v60  ;;  %v294_v28 = vadd.f32 %v293_v63, %v1068_v49 }
  0x64   : > { %v448_v35 = vsel %vm384_vm7, %v352_v19, %v416_v31  ;;  %v283_v7 = vrot.slane %v282_v40, 1  ;;  %v301_v12 = vadd.f32 %v300_v11, %v1072_v54  ;;  %v200_v46 = vmul.f32 %v1126_v34, %v1126_v34 }
  0x65   : > { %480 = vst [vmem:[%s1110_s17 + $0x38] sm:$0xff] %v448_v35  ;;  %v323_v47 = vadd.f32 1e-05, %v277_v41  ;;  %v290_v14 = vrot.slane %v289_v42, 1  ;;  %v295_v51 = vrot.slane %v294_v28, 2  ;;  %v361_v10 = vmul.f32 %v1078_v56, %v919_v1 }
  0x66   : > { %v284_v22 = vadd.f32 %v283_v7, %v282_v40  ;;  %v302_v60 = vrot.slane %v301_v12, 2  ;;  %v306_v25 = vadd.f32 %v200_v46, %v1076_v55  ;;  %v362_v49 = vmul.f32 %v1083_v3, %v929_v5 }
  0x67   : > { %680 = vrsqrt.f32 %v323_v47  ;;  %v291_v63 = vadd.f32 %v290_v14, %v289_v42  ;;  %v296_v54 = vadd.f32 %v295_v51, %v294_v28  ;;  %vm393_vm8 = vcmp.ge.f32.partialorder %v361_v10, 0.0 }
  0x68   : > { %v324_v11 = vadd.f32 1e-05, %v284_v22  ;;  %v303_v50 = vadd.f32 %v302_v60, %v301_v12  ;;  %v307_v59 = vrot.slane %v306_v25, 4  ;;  %v425_v4 = vmul.f32 0.1, %v361_v10 }
  0x69   : > { %v325_v9 = vadd.f32 1e-05, %v291_v63  ;;  %v297_v20 = vrot.slane %v296_v54, 1  ;;  %vm394_vm9 = vcmp.ge.f32.partialorder %v362_v49, 0.0  ;;  %v426_v1 = vmul.f32 0.1, %v362_v49 }
  0x6a   : > { %682 = vrsqrt.f32 %v324_v11  ;;  %v304_v56 = vrot.slane %v303_v50, 1  ;;  %v308_v55 = vadd.f32 %v307_v59, %v306_v25  ;;  %v457_v17 = vsel %vm393_vm8, %v361_v10, %v425_v4 }
  0x6b   : > { %684 = vrsqrt.f32 %v325_v9  ;;  %v298_v5 = vadd.f32 %v297_v20, %v296_v54  ;;  %489 = vst [vmem:[%s1110_s17 + $0x80] sm:$0xff] %v457_v17  ;;  %v458_v3 = vsel %vm394_vm9, %v362_v49, %v426_v1  ;;  %v363_v19 = vmul.f32 %v1089_v16, %v937_v8 }
  0x6c   : > { %v305_v30 = vadd.f32 %v304_v56, %v303_v50  ;;  %v309_v26 = vrot.slane %v308_v55, 2  ;;  %490 = vst [vmem:[%s1110_s17 + $0x88] sm:$0xff] %v458_v3  ;;  %v364_v0 = vmul.f32 %v1094_v29, %v949_v13  ;;  %v365_v2 = vmul.f32 %v1098_v32, %v959_v18 }
  0x6d   : > { %v326_v31 = vadd.f32 1e-05, %v298_v5  ;;  %vm395_vm10 = vcmp.ge.f32.partialorder %v363_v19, 0.0  ;;  %v427_v40 = vmul.f32 0.1, %v363_v19  ;;  %v366_v41 = vmul.f32 %v1102_v38, %v967_v21 }
  0x6e   : > { %v677_v42 = vpop.eup %676  ;;  %v327_v28 = vadd.f32 1e-05, %v305_v30  ;;  %v310_v35 = vadd.f32 %v309_v26, %v308_v55  ;;  %vm396_vm11 = vcmp.ge.f32.partialorder %v364_v0, 0.0  ;;  %v428_v8 = vmul.f32 0.1, %v364_v0 }
  0x6f   : > { %v353_v16 = vmul.f32 %v677_v42, %v996_v33  ;;  %686 = vrsqrt.f32 %v326_v31  ;;  %v459_v13 = vsel %vm395_vm10, %v363_v19, %v427_v40  ;;  %vm397_vm12 = vcmp.ge.f32.partialorder %v365_v2, 0.0 }
  0x70   : > { %v679_v29 = vpop.eup %678  ;;  %688 = vrsqrt.f32 %v327_v28  ;;  %v311_v18 = vrot.slane %v310_v35, 1  ;;  %491 = vst [vmem:[%s1110_s17 + $0x90] sm:$0xff] %v459_v13  ;;  %v460_v32 = vsel %vm396_vm11, %v364_v0, %v428_v8  ;;  %v429_v7 = vmul.f32 0.1, %v365_v2 }
  0x71   : > { %vm385_vm13 = vcmp.ge.f32.partialorder %v353_v16, 0.0  ;;  %v417_v21 = vmul.f32 0.1, %v353_v16  ;;  %v354_v38 = vmul.f32 %v679_v29, %v1002_v43  ;;  %492 = vst [vmem:[%s1110_s17 + $0x98] sm:$0xff] %v460_v32  ;;  %vm398_vm14 = vcmp.ge.f32.partialorder %v366_v41, 0.0 }
  0x72   : > { %v312_v12 = vadd.f32 %v311_v18, %v310_v35  ;;  %v461_v46 = vsel %vm397_vm12, %v365_v2, %v429_v7  ;;  %v430_v33 = vmul.f32 0.1, %v366_v41  ;;  %v367_v47 = vmul.f32 %v1106_v45, %v977_v27 }
  0x73   : > { %v449_v14 = vsel %vm385_vm13, %v353_v16, %v417_v21  ;;  %vm386_vm15 = vcmp.ge.f32.partialorder %v354_v38, 0.0  ;;  %v418_v51 = vmul.f32 0.1, %v354_v38  ;;  %493 = vst [vmem:[%s1110_s17 + $0xa0] sm:$0xff] %v461_v46  ;;  %v368_v10 = vmul.f32 %v1118_v58, %v989_v37 }
  0x74   : > { %v681_v22 = vpop.eup %680  ;;  %481 = vst [vmem:[%s1110_s17 + $0x40] sm:$0xff] %v449_v14  ;;  %v328_v43 = vadd.f32 1e-05, %v312_v12  ;;  %v462_v60 = vsel %vm398_vm14, %v366_v41, %v430_v33  ;;  %vm399_vm0 = vcmp.ge.f32.partialorder %v367_v47, 0.0  ;;  %v431_v25 = vmul.f32 0.1, %v367_v47 }
  0x75   : > { %v450_v49 = vsel %vm386_vm15, %v354_v38, %v418_v51  ;;  %v355_v63 = vmul.f32 %v681_v22, %v1010_v48  ;;  %494 = vst [vmem:[%s1110_s17 + $0xa8] sm:$0xff] %v462_v60  ;;  %vm400_vm1 = vcmp.ge.f32.partialorder %v368_v10, 0.0  ;;  %v432_v27 = vmul.f32 0.1, %v368_v10 }
  0x76   : > { %482 = vst [vmem:[%s1110_s17 + $0x48] sm:$0xff] %v450_v49  ;;  %690 = vrsqrt.f32 %v328_v43  ;;  %v463_v45 = vsel %vm399_vm0, %v367_v47, %v431_v25  ;;  %v369_v54 = vmul.f32 %v677_v42, %v999_v39  ;;  %v370_v37 = vmul.f32 %v679_v29, %v1005_v44 }
  0x77   : > { %v683_v58 = vpop.eup %682  ;;  %vm387_vm2 = vcmp.ge.f32.partialorder %v355_v63, 0.0  ;;  %v419_v11 = vmul.f32 0.1, %v355_v63  ;;  %495 = vst [vmem:[%s1110_s17 + $0xb0] sm:$0xff] %v463_v45  ;;  %v464_v50 = vsel %vm400_vm1, %v368_v10, %v432_v27  ;;  %v371_v59 = vmul.f32 %v681_v22, %v1015_v52 }
  0x78   : > { %v685_v48 = vpop.eup %684  ;;  %v356_v4 = vmul.f32 %v683_v58, %v1018_v53  ;;  %496 = vst [vmem:[%s1110_s17 + $0xb8] sm:$0xff] %v464_v50  ;;  %vm401_vm3 = vcmp.ge.f32.partialorder %v369_v54, 0.0  ;;  %v433_v9 = vmul.f32 0.1, %v369_v54  ;;  %vm402_vm4 = vcmp.ge.f32.partialorder %v370_v37, 0.0 }
  0x79   : > { %v451_v20 = vsel %vm387_vm2, %v355_v63, %v419_v11  ;;  %v357_v39 = vmul.f32 %v685_v48, %v1030_v61  ;;  %v434_v44 = vmul.f32 0.1, %v370_v37  ;;  %vm403_vm5 = vcmp.ge.f32.partialorder %v371_v59, 0.0 }
  0x7a   : > { %483 = vst [vmem:[%s1110_s17 + $0x50] sm:$0xff] %v451_v20  ;;  %vm388_vm6 = vcmp.ge.f32.partialorder %v356_v4, 0.0  ;;  %v420_v1 = vmul.f32 0.1, %v356_v4  ;;  %v465_v56 = vsel %vm401_vm3, %v369_v54, %v433_v9  ;;  %v435_v52 = vmul.f32 0.1, %v371_v59 }
  0x7b   : > { %vm389_vm7 = vcmp.ge.f32.partialorder %v357_v39, 0.0  ;;  %v421_v53 = vmul.f32 0.1, %v357_v39  ;;  %497 = vst [vmem:[%s1110_s17 + $0xc0] sm:$0xff] %v465_v56  ;;  %v466_v55 = vsel %vm402_vm4, %v370_v37, %v434_v44  ;;  %v372_v17 = vmul.f32 %v683_v58, %v1025_v57 }
  0x7c   : > { %v687_v5 = vpop.eup %686  ;;  %v452_v3 = vsel %vm388_vm6, %v356_v4, %v420_v1  ;;  %498 = vst [vmem:[%s1110_s17 + $0xc8] sm:$0xff] %v466_v55  ;;  %v467_v61 = vsel %vm403_vm5, %v371_v59, %v435_v52  ;;  %v373_v19 = vmul.f32 %v685_v48, %v1033_v62 }
  0x7d   : > { %v689_v30 = vpop.eup %688  ;;  %484 = vst [vmem:[%s1110_s17 + $0x58] sm:$0xff] %v452_v3  ;;  %v453_v26 = vsel %vm389_vm7, %v357_v39, %v421_v53  ;;  %v358_v0 = vmul.f32 %v687_v5, %v1040_v6  ;;  %499 = vst [vmem:[%s1110_s17 + $0xd0] sm:$0xff] %v467_v61  ;;  %vm404_vm8 = vcmp.ge.f32.partialorder %v372_v17, 0.0  ;;  %v436_v2 = vmul.f32 0.1, %v372_v17 }
  0x7e   : > { %485 = vst [vmem:[%s1110_s17 + $0x60] sm:$0xff] %v453_v26  ;;  %v359_v31 = vmul.f32 %v689_v30, %v1052_v23  ;;  %vm405_vm9 = vcmp.ge.f32.partialorder %v373_v19, 0.0  ;;  %v437_v57 = vmul.f32 0.1, %v373_v19  ;;  %v374_v40 = vmul.f32 %v687_v5, %v1045_v15 }
  0x7f   : > { %vm390_vm10 = vcmp.ge.f32.partialorder %v358_v0, 0.0  ;;  %v422_v62 = vmul.f32 0.1, %v358_v0  ;;  %v468_v41 = vsel %vm404_vm8, %v372_v17, %v436_v2  ;;  %v375_v42 = vmul.f32 %v689_v30, %v1055_v24 }
  0x80   : > { %vm391_vm11 = vcmp.ge.f32.partialorder %v359_v31, 0.0  ;;  %v423_v6 = vmul.f32 0.1, %v359_v31  ;;  %500 = vst [vmem:[%s1110_s17 + $0xd8] sm:$0xff] %v468_v41  ;;  %v469_v28 = vsel %vm405_vm9, %v373_v19, %v437_v57  ;;  %vm406_vm12 = vcmp.ge.f32.partialorder %v374_v40, 0.0 }
  0x81   : > { %v454_v23 = vsel %vm390_vm10, %v358_v0, %v422_v62  ;;  %501 = vst [vmem:[%s1110_s17 + $0xe0] sm:$0xff] %v469_v28  ;;  %v438_v35 = vmul.f32 0.1, %v374_v40  ;;  %vm407_vm13 = vcmp.ge.f32.partialorder %v375_v42, 0.0  ;;  %v439_v15 = vmul.f32 0.1, %v375_v42 }
  0x82   : > { %486 = vst [vmem:[%s1110_s17 + $0x68] sm:$0xff] %v454_v23  ;;  %v455_v8 = vsel %vm391_vm11, %v359_v31, %v423_v6 }
  0x83   : > { %v691_v16 = vpop.eup %690  ;;  %487 = vst [vmem:[%s1110_s17 + $0x70] sm:$0xff] %v455_v8  ;;  %v470_v13 = vsel %vm406_vm12, %v374_v40, %v438_v35  ;;  %v471_v24 = vsel %vm407_vm13, %v375_v42, %v439_v15 }
  0x84   : > { %v360_v29 = vmul.f32 %v691_v16, %v1062_v36  ;;  %502 = vst [vmem:[%s1110_s17 + $0xe8] sm:$0xff] %v470_v13  ;;  %503 = vst [vmem:[%s1110_s17 + $0xf0] sm:$0xff] %v471_v24  ;;  %v376_v18 = vmul.f32 %v691_v16, %v1126_v34 }
  0x86   : > { %vm392_vm14 = vcmp.ge.f32.partialorder %v360_v29, 0.0  ;;  %v424_v32 = vmul.f32 0.1, %v360_v29  ;;  %vm408_vm15 = vcmp.ge.f32.partialorder %v376_v18, 0.0  ;;  %v440_v7 = vmul.f32 0.1, %v376_v18 }
  0x88   : > { %v456_v36 = vsel %vm392_vm14, %v360_v29, %v424_v32  ;;  %v472_v21 = vsel %vm408_vm15, %v376_v18, %v440_v7 }
  0x89   : > { %488 = vst [vmem:[%s1110_s17 + $0x78] sm:$0xff] %v456_v36  ;;  %504 = vst [vmem:[%s1110_s17 + $0xf8] sm:$0xff] %v472_v21 }
  0x8a   : > { %733 = shalt.err (!%p730_p10)
}
  0x8b   : > { %s734_s14 = scalar_lea.hbm %s1199_s3, 4096  ;;  %s738_s21 = scalar_lea.hbm %s1247_s1, 8192 }
  0x8c   : > { %p735_p1 = scmp.ne.s32.totalorder %s1199_s3, %s734_s14  ;;  %p739_p0 = scmp.lt.s32.totalorder %s1199_s3, %s1247_s1 }
  0x8d   : > { %p740_p2 = scmp.lt.s32.totalorder %s738_s21, %s734_s14 }
  0x8e   : > { %p736_p3 = pnand %p735_p1, %p1257_p12 }
  0x8f   : > { %p741_p6 = por %p740_p2, %p739_p0 }
  0x90   : > { %p737_p9 = pneg %p736_p3 }
  0x92   : > { %p742_p11 = pnand %p741_p6, %p737_p9 }
  0x94   : > { %745 = shalt.err (!%p742_p11)
}
  0x95   : > { %s791_s26 = smov 2048   ;;  %s792_s30 = smov 4096  }
  0x96   : > { %s793_s2 = smov 128  }
  0x97   : > { %610 = dma.vmem_to_hbm [thread:$0]  (%p1257_p12), %s1201_s27, 4096, %s1199_s3, %s506_s10, %s791_s26, %s792_s30, %s793_s2  }
  0x98 PF: > { %s534_s17 = sand.u32 1, %s772_s6   ;;  %p1258_p13 = scmp.ne.s32.totalorder %s1253_s19, 0 }
  0x99   : > { %p1259_p4 = scmp.ge.s32.totalorder %s784_s9, 2  ;;  %s535_s25 = scalar_lea.sflag [#allocation4], %s534_s17 }
  0x9b   : > { %p617_p5 = pnand %p1259_p4, %p1258_p13 }
  0x9d   : > { %p618_p7 = pneg %p617_p5 }
  0x9f   : > { %767 = dma.done.wait (%p618_p7), %s535_s25, 4096  }
  0xa0   : > { %769 = vsyncadd (%p618_p7), %s535_s25, 4294963200  ;;  %p14_p8 = scmp.ge.s32.totalorder %s829_s12, 4   ;;  %s1260_s6 = smov %s776_s7 }
  0xa1   : > { %s1261_s7 = smov %s780_s8  ;;  %s1262_s8 = smov %s841_s15 }
  0xa2   : > { %s1263_s9 = smov %s829_s12  ;;  %16 = sbr.rel (!%p14_p8) target bundleno = 5 (0x5), region = 69 }
  0xa7   :  { %540 = vsyncpa [#allocation3], 1 }
  0xa8   :  { %542 = vsyncpa [#allocation3 + $0x1], 1 }
  0xa9   :  { %543 = vsyncpa [#allocation4], 1 }
  0xaa   :  { %545 = vsyncpa [#allocation4 + $0x1], 1 }

</bundles_post_ra>
